<compile_context>
chip_gen: v6e
topology: v6e:2x2x1
jax: 0.10.0
libtpu: 0.0.40
codegen_flags: <defaults>
</compile_context>

<pallas_src>
import functools

import jax
import jax.numpy as jnp
from jax.experimental import pallas as pl
from jax.experimental.pallas import tpu as pltpu

num_bond_direction = 3
num_bond_type = 6
num_aromatic = 2
num_atom_type = 120
num_chirality_tag = 3
num_degree = 11
num_formal_charge = 11
num_hybrid = 7

BN_EPS = 1e-5
LANE = 128
EDGE_TBL_ROWS = 16              # 6 bond-type rows + 3 bond-direction rows, padded to 16
VMEM_LIMIT = 48 * 1024 * 1024   # raise scoped VMEM above 16/32 MiB defaults, < 64 MiB (v7x)
MAX_TILE = 512                  # node-tile size; fits v7x 64 MiB VMEM with 2x buffering


def _round_up(x, m):
    return ((x + m - 1) // m) * m


# ---------------------------------------------------------------------------
# Kernel A: tiled neighbor aggregation + GIN MLP
#   aggr[i] = sum_{e: dst(e)=i} (h[src(e)] + edge_emb[e])
#           = A[i, :] @ h  +  counts[i, :] @ [edge_emb1 ; edge_emb2]
#   z = W2 @ relu(W1 @ aggr + b1) + b2
# grid = (row_tiles, src_tiles); src (contraction) axis is last and 'arbitrary'.
# ---------------------------------------------------------------------------
def _gin_aggr_mlp_kernel(A_ref, h_ref, C_ref, T_ref, W1_ref, b1_ref, W2_ref, b2_ref,
                         z_ref, acc_ref):
    k = pl.program_id(1)

    @pl.when(k == 0)
    def _():
        # Edge-message contribution via tiny count-matrix matmul (replaces the
        # O(N*E) dense one-hot matmul of the previous version).
        acc_ref[...] = jnp.dot(C_ref[...], T_ref[...],
                               preferred_element_type=jnp.float32)

    # Neighbor aggregation: bf16 operands on the MXU, f32 accumulation.
    acc_ref[...] += jnp.dot(A_ref[...], h_ref[...],
                            preferred_element_type=jnp.float32)

    @pl.when(k == pl.num_programs(1) - 1)
    def _():
        z = jnp.dot(acc_ref[...], W1_ref[...],
                    preferred_element_type=jnp.float32) + b1_ref[...]
        z = jnp.maximum(z, 0.0)
        z = jnp.dot(z, W2_ref[...],
                    preferred_element_type=jnp.float32) + b2_ref[...]
        z_ref[...] = z


def gin_aggr_mlp(A, h, C, edge_tbl, W1, b1, W2, b2, *, tm):
    Np = A.shape[0]
    Dp = h.shape[1]
    Hp = W1.shape[1]
    Ce = C.shape[1]
    n_i = Np // tm
    n_k = Np // tm
    return pl.pallas_call(
        _gin_aggr_mlp_kernel,
        out_shape=jax.ShapeDtypeStruct((Np, Dp), jnp.float32),
        grid_spec=pltpu.PrefetchScalarGridSpec(
            num_scalar_prefetch=0,
            grid=(n_i, n_k),
            in_specs=[
                pl.BlockSpec((tm, tm), lambda i, k: (i, k)),   # A tile (bf16)
                pl.BlockSpec((tm, Dp), lambda i, k: (k, 0)),   # h source tile (bf16)
                pl.BlockSpec((tm, Ce), lambda i, k: (i, 0)),   # edge-count tile
                pl.BlockSpec((Ce, Dp), lambda i, k: (0, 0)),   # stacked edge tables
                pl.BlockSpec((Dp, Hp), lambda i, k: (0, 0)),   # W1
                pl.BlockSpec((1, Hp), lambda i, k: (0, 0)),    # b1
                pl.BlockSpec((Hp, Dp), lambda i, k: (0, 0)),   # W2
                pl.BlockSpec((1, Dp), lambda i, k: (0, 0)),    # b2
            ],
            out_specs=pl.BlockSpec((tm, Dp), lambda i, k: (i, 0)),
            scratch_shapes=[pltpu.VMEM((tm, Dp), jnp.float32)],
        ),
        compiler_params=pltpu.CompilerParams(
            dimension_semantics=("parallel", "arbitrary"),
            vmem_limit_bytes=VMEM_LIMIT,
        ),
    )(A, h, C, edge_tbl, W1, b1, W2, b2)


# ---------------------------------------------------------------------------
# Kernel B: BatchNorm1d normalize (+ optional ReLU), tiled over rows.
# mean / rstd are computed over the real N rows in JAX glue (cross-tile stats),
# so any row tiling stays numerically identical to full-batch BatchNorm.
# ---------------------------------------------------------------------------
def _bn_act_kernel(z_ref, mean_ref, rstd_ref, gamma_ref, beta_ref, out_ref, *,
                   apply_relu):
    y = (z_ref[...] - mean_ref[...]) * (rstd_ref[...] * gamma_ref[...]) + beta_ref[...]
    if apply_relu:
        y = jnp.maximum(y, 0.0)
    out_ref[...] = y


def bn_act(z, mean, rstd, gamma, beta, *, tm, apply_relu):
    Np, Dp = z.shape
    n_i = Np // tm
    kernel = functools.partial(_bn_act_kernel, apply_relu=apply_relu)
    return pl.pallas_call(
        kernel,
        out_shape=jax.ShapeDtypeStruct((Np, Dp), jnp.float32),
        grid_spec=pltpu.PrefetchScalarGridSpec(
            num_scalar_prefetch=0,
            grid=(n_i,),
            in_specs=[
                pl.BlockSpec((tm, Dp), lambda i: (i, 0)),
                pl.BlockSpec((1, Dp), lambda i: (0, 0)),
                pl.BlockSpec((1, Dp), lambda i: (0, 0)),
                pl.BlockSpec((1, Dp), lambda i: (0, 0)),
                pl.BlockSpec((1, Dp), lambda i: (0, 0)),
            ],
            out_specs=pl.BlockSpec((tm, Dp), lambda i: (i, 0)),
        ),
        compiler_params=pltpu.CompilerParams(
            dimension_semantics=("parallel",),
            vmem_limit_bytes=VMEM_LIMIT,
        ),
    )(z, mean, rstd, gamma, beta)


# ---------------------------------------------------------------------------
# Deterministic parameter init (shapes match the PyTorch module; zero-padded to
# lane-dense D_pad so padded columns never affect the real emb_dim columns).
# ---------------------------------------------------------------------------
def _xavier_uniform(key, shape, pad_cols):
    rows, cols = shape
    bound = (6.0 / (rows + cols)) ** 0.5
    W = jax.random.uniform(key, shape, jnp.float32, -bound, bound)
    return jnp.zeros((rows, pad_cols), jnp.float32).at[:, :cols].set(W)


def _linear_init(key, fan_in, fan_out, pad_in, pad_out):
    kw, kb = jax.random.split(key)
    bound = 1.0 / (fan_in ** 0.5)
    # store W already transposed: [fan_in, fan_out] so the kernel does x @ W
    W = jax.random.uniform(kw, (fan_in, fan_out), jnp.float32, -bound, bound)
    b = jax.random.uniform(kb, (fan_out,), jnp.float32, -bound, bound)
    Wp = jnp.zeros((pad_in, pad_out), jnp.float32).at[:fan_in, :fan_out].set(W)
    bp = jnp.zeros((1, pad_out), jnp.float32).at[0, :fan_out].set(b)
    return Wp, bp


def init_gnn_params(key, num_layer, emb_dim):
    Dp = max(LANE, _round_up(emb_dim, LANE))
    Hp = 2 * Dp
    keys = jax.random.split(key, 6 + num_layer)
    x_emb_sizes = [num_atom_type, num_degree, num_formal_charge,
                   num_hybrid, num_aromatic, num_chirality_tag]
    x_emb = [_xavier_uniform(keys[i], (n, emb_dim), Dp)
             for i, n in enumerate(x_emb_sizes)]

    layers = []
    for layer in range(num_layer):
        lk = jax.random.split(keys[6 + layer], 4)
        W1, b1 = _linear_init(lk[0], emb_dim, 2 * emb_dim, Dp, Hp)
        W2, b2 = _linear_init(lk[1], 2 * emb_dim, emb_dim, Hp, Dp)
        e1 = _xavier_uniform(lk[2], (num_bond_type, emb_dim), Dp)
        e2 = _xavier_uniform(lk[3], (num_bond_direction, emb_dim), Dp)
        edge_tbl = jnp.zeros((EDGE_TBL_ROWS, Dp), jnp.float32)
        edge_tbl = edge_tbl.at[:num_bond_type].set(e1)
        edge_tbl = edge_tbl.at[num_bond_type:num_bond_type + num_bond_direction].set(e2)
        layers.append(dict(
            W1=W1, b1=b1, W2=W2, b2=b2, edge_tbl=edge_tbl,
            gamma=jnp.zeros((1, Dp), jnp.float32).at[0, :emb_dim].set(1.0),
            beta=jnp.zeros((1, Dp), jnp.float32),
        ))
    return dict(x_emb=x_emb, layers=layers)


# ---------------------------------------------------------------------------
# GNN forward (JK='last', drop_ratio=0 -> dropout is identity)
# ---------------------------------------------------------------------------
def gnn_forward(params, x, edge_index, edge_attr, *, num_layer, emb_dim):
    N = x.shape[0]
    Dp = params["x_emb"][0].shape[1]

    # Node tile: multiple of 16 (bf16 sublane packing); pad N to a tile multiple.
    tm = min(MAX_TILE, _round_up(N, 16))
    Np = _round_up(N, tm)

    # Node feature embedding: sum of 6 table lookups (gather -> plain-JAX glue)
    h = params["x_emb"][0][x[:, 0]]
    for i in range(1, 6):
        h = h + params["x_emb"][i][x[:, i]]
    h = jnp.zeros((Np, Dp), jnp.float32).at[:N].set(h)

    # add_self_loops + self-loop edge attr ([:,0]=4, [:,1]=0)
    sl_index = jnp.tile(jnp.arange(N, dtype=edge_index.dtype)[None, :], (2, 1))
    ei = jnp.concatenate([edge_index, sl_index], axis=1)
    sl_attr = jnp.zeros((N, 2), edge_attr.dtype).at[:, 0].set(4)
    ea = jnp.concatenate([edge_attr, sl_attr], axis=0)
    src, dst = ei[0], ei[1]

    # Dense aggregation operator (edge multiplicities, exact as small ints in bf16)
    A = jnp.zeros((Np, Np), jnp.float32).at[dst, src].add(1.0).astype(jnp.bfloat16)
    # Per-destination-node edge-attribute count matrix [Np, 16]:
    #   cols 0..5 bond-type counts, cols 6..8 bond-direction counts.
    C = jnp.zeros((Np, EDGE_TBL_ROWS), jnp.float32)
    C = C.at[dst, ea[:, 0]].add(1.0)
    C = C.at[dst, num_bond_type + ea[:, 1]].add(1.0)

    # TODO(synk): dropout with drop_ratio > 0 not implemented (default 0 -> identity)
    # TODO(synk): layer-fused variant (h resident in VMEM across layers) and
    #             sparse/segment aggregation for very large sparse graphs not implemented.
    for layer in range(num_layer):
        lp = params["layers"][layer]
        # bf16 h on the aggregation MXU path (f32 accumulation); validate vs a
        # full-f32 reference with a relaxed tolerance.
        z = gin_aggr_mlp(A, h.astype(jnp.bfloat16), C, lp["edge_tbl"],
                         lp["W1"], lp["b1"], lp["W2"], lp["b2"], tm=tm)
        # BatchNorm1d training-mode batch statistics over the REAL N rows only
        # (cross-tile reduction done in JAX glue so row tiling stays exact).
        zr = z[:N]
        mean = jnp.mean(zr, axis=0, keepdims=True)
        var = jnp.mean((zr - mean) ** 2, axis=0, keepdims=True)
        rstd = jax.lax.rsqrt(var + BN_EPS)
        h = bn_act(z, mean, rstd, lp["gamma"], lp["beta"], tm=tm,
                   apply_relu=(layer != num_layer - 1))
    return h[:N, :emb_dim]  # JK == 'last'; strip row / lane padding


# ---------------------------------------------------------------------------
if __name__ == "__main__":
    num_layer = 2
    emb_dim = 32
    N, E = 8, 16

    key = jax.random.PRNGKey(0)
    kp, kx, ke, ka = jax.random.split(key, 4)

    params = init_gnn_params(kp, num_layer, emb_dim)

    # Node features: [N, 6] integer indices into the 6 embedding tables
    x_maxes = jnp.array([num_atom_type, num_degree, num_formal_charge,
                         num_hybrid, num_aromatic, num_chirality_tag])
    x = jax.random.randint(kx, (N, 6), 0, 1_000_000, dtype=jnp.int32) % x_maxes

    # Edges: [2, E] indices, edge_attr: [E, 2] (bond type < 6, bond direction < 3)
    edge_index = jax.random.randint(ke, (2, E), 0, N, dtype=jnp.int32)
    ka1, ka2 = jax.random.split(ka)
    edge_attr = jnp.stack([
        jax.random.randint(ka1, (E,), 0, num_bond_type, dtype=jnp.int32),
        jax.random.randint(ka2, (E,), 0, num_bond_direction, dtype=jnp.int32),
    ], axis=1)

    fwd = jax.jit(functools.partial(gnn_forward, num_layer=num_layer, emb_dim=emb_dim))
    out = fwd(params, x, edge_index, edge_attr)
    out = jax.block_until_ready(out)
    assert out.shape == (N, emb_dim) and out.dtype == jnp.float32
    print("KERNEL_OK")
</pallas_src>

<mosaic_0001>
module attributes {stable_mosaic.version = 11 : i64} {
  func.func private @main(%arg0: i32) attributes {dimension_semantics = [#tpu.dimension_semantics<core_parallel>], iteration_bounds = array<i64: 2>, tpu.core_type = #tpu.core_type<sc_scalar_subcore>, window_params = []} {
    return
  }
}

module attributes {stable_mosaic.version = 11 : i64} {
  func.func private @main(%arg0: i32) attributes {dimension_semantics = [#tpu.dimension_semantics<core_parallel>], iteration_bounds = array<i64: 2>, tpu.core_type = #tpu.core_type<sc_scalar_subcore>, window_params = []} {
    return
  }
}

module attributes {stable_mosaic.version = 11 : i64} {
  func.func @_gin_aggr_mlp_kernel(%arg0: i32, %arg1: i32, %arg2: memref<16x16xbf16, #tpu.memory_space<vmem>>, %arg3: memref<16x128xbf16, #tpu.memory_space<vmem>>, %arg4: memref<16x16xf32, #tpu.memory_space<vmem>>, %arg5: memref<16x128xf32, #tpu.memory_space<vmem>>, %arg6: memref<128x256xf32, #tpu.memory_space<vmem>>, %arg7: memref<1x256xf32, #tpu.memory_space<vmem>>, %arg8: memref<256x128xf32, #tpu.memory_space<vmem>>, %arg9: memref<1x128xf32, #tpu.memory_space<vmem>>, %arg10: memref<16x128xf32, #tpu.memory_space<vmem>>, %arg11: memref<16x128xf32, #tpu.memory_space<vmem>>) attributes {dimension_semantics = [#tpu.dimension_semantics<parallel>, #tpu.dimension_semantics<arbitrary>], iteration_bounds = array<i64: 1, 1>, scalar_prefetch = 0 : i64, scratch_operands = 1 : i64, tpu.core_type = #tpu.core_type<tc>, window_params = [{transform_indices = @transform_0, window_bounds = array<i64: 16, 16>}, {transform_indices = @transform_1, window_bounds = array<i64: 16, 128>}, {transform_indices = @transform_2, window_bounds = array<i64: 16, 16>}, {pipeline_mode = #tpu.pipeline_mode<synchronous>, transform_indices = @transform_3, window_bounds = array<i64: 16, 128>}, {pipeline_mode = #tpu.pipeline_mode<synchronous>, transform_indices = @transform_4, window_bounds = array<i64: 128, 256>}, {pipeline_mode = #tpu.pipeline_mode<synchronous>, transform_indices = @transform_5, window_bounds = array<i64: 1, 256>}, {pipeline_mode = #tpu.pipeline_mode<synchronous>, transform_indices = @transform_6, window_bounds = array<i64: 256, 128>}, {pipeline_mode = #tpu.pipeline_mode<synchronous>, transform_indices = @transform_7, window_bounds = array<i64: 1, 128>}, {transform_indices = @transform_8, window_bounds = array<i64: 16, 128>}]} {
    %c0_i32 = arith.constant 0 : i32
    %0 = arith.cmpi eq, %arg1, %c0_i32 : i32
    %1 = arith.extui %0 : i1 to i32
    %c0_i32_0 = arith.constant 0 : i32
    %2 = arith.cmpi ne, %1, %c0_i32_0 : i32
    scf.if %2 {
      %c0_10 = arith.constant 0 : index
      %c0_11 = arith.constant 0 : index
      %12 = vector.load %arg4[%c0_10, %c0_11] : memref<16x16xf32, #tpu.memory_space<vmem>>, vector<16x16xf32>
      %c0_12 = arith.constant 0 : index
      %c0_13 = arith.constant 0 : index
      %13 = vector.load %arg5[%c0_12, %c0_13] : memref<16x128xf32, #tpu.memory_space<vmem>>, vector<16x128xf32>
      %cst_14 = arith.constant dense<0.000000e+00> : vector<16x128xf32>
      %14 = tpu.matmul %12, %13, %cst_14 {dimension_numbers = #tpu.dot_dimension_numbers<[1], [0], [0], [1], [0, 0, 1, 1], [], []>} : vector<16x16xf32>, vector<16x128xf32>, vector<16x128xf32> -> vector<16x128xf32>
      %c0_15 = arith.constant 0 : index
      %c0_16 = arith.constant 0 : index
      %15 = vector.load %arg11[%c0_15, %c0_16] : memref<16x128xf32, #tpu.memory_space<vmem>>, vector<16x128xf32>
      tpu.vector_store %arg11[%c0_15, %c0_16], %14 {strides = array<i32>} : memref<16x128xf32, #tpu.memory_space<vmem>>, vector<16x128xf32>,
    } else {
    }
    %c0 = arith.constant 0 : index
    %c0_1 = arith.constant 0 : index
    %3 = vector.load %arg11[%c0, %c0_1] : memref<16x128xf32, #tpu.memory_space<vmem>>, vector<16x128xf32>
    %c0_2 = arith.constant 0 : index
    %c0_3 = arith.constant 0 : index
    %4 = vector.load %arg2[%c0_2, %c0_3] : memref<16x16xbf16, #tpu.memory_space<vmem>>, vector<16x16xbf16>
    %c0_4 = arith.constant 0 : index
    %c0_5 = arith.constant 0 : index
    %5 = vector.load %arg3[%c0_4, %c0_5] : memref<16x128xbf16, #tpu.memory_space<vmem>>, vector<16x128xbf16>
    %cst = arith.constant dense<0.000000e+00> : vector<16x128xf32>
    %6 = tpu.matmul %4, %5, %cst {dimension_numbers = #tpu.dot_dimension_numbers<[1], [0], [0], [1], [0, 0, 1, 1], [], []>} : vector<16x16xbf16>, vector<16x128xbf16>, vector<16x128xf32> -> vector<16x128xf32>
    %7 = arith.addf %3, %6 : vector<16x128xf32>
    %c0_6 = arith.constant 0 : index
    %c0_7 = arith.constant 0 : index
    %8 = vector.load %arg11[%c0_6, %c0_7] : memref<16x128xf32, #tpu.memory_space<vmem>>, vector<16x128xf32>
    tpu.vector_store %arg11[%c0_6, %c0_7], %7 {strides = array<i32>} : memref<16x128xf32, #tpu.memory_space<vmem>>, vector<16x128xf32>,
    %c0_i32_8 = arith.constant 0 : i32
    %9 = arith.cmpi eq, %arg1, %c0_i32_8 : i32
    %10 = arith.extui %9 : i1 to i32
    %c0_i32_9 = arith.constant 0 : i32
    %11 = arith.cmpi ne, %10, %c0_i32_9 : i32
    scf.if %11 {
      %c0_10 = arith.constant 0 : index
      %c0_11 = arith.constant 0 : index
      %12 = vector.load %arg11[%c0_10, %c0_11] : memref<16x128xf32, #tpu.memory_space<vmem>>, vector<16x128xf32>
      %c0_12 = arith.constant 0 : index
      %c0_13 = arith.constant 0 : index
      %13 = vector.load %arg6[%c0_12, %c0_13] : memref<128x256xf32, #tpu.memory_space<vmem>>, vector<128x256xf32>
      %cst_14 = arith.constant dense<0.000000e+00> : vector<16x256xf32>
      %14 = tpu.matmul %12, %13, %cst_14 {dimension_numbers = #tpu.dot_dimension_numbers<[1], [0], [0], [1], [0, 0, 1, 1], [], []>} : vector<16x128xf32>, vector<128x256xf32>, vector<16x256xf32> -> vector<16x256xf32>
      %c0_15 = arith.constant 0 : index
      %c0_16 = arith.constant 0 : index
      %15 = vector.load %arg7[%c0_15, %c0_16] : memref<1x256xf32, #tpu.memory_space<vmem>>, vector<1x256xf32>
      %16 = vector.broadcast %15 : vector<1x256xf32> to vector<16x256xf32>
      %17 = arith.addf %14, %16 : vector<16x256xf32>
      %cst_17 = arith.constant 0.000000e+00 : f32
      %18 = vector.broadcast %cst_17 : f32 to vector<16x256xf32>
      %19 = arith.maximumf %17, %18 : vector<16x256xf32>
      %c0_18 = arith.constant 0 : index
      %c0_19 = arith.constant 0 : index
      %20 = vector.load %arg8[%c0_18, %c0_19] : memref<256x128xf32, #tpu.memory_space<vmem>>, vector<256x128xf32>
      %cst_20 = arith.constant dense<0.000000e+00> : vector<16x128xf32>
      %21 = tpu.matmul %19, %20, %cst_20 {dimension_numbers = #tpu.dot_dimension_numbers<[1], [0], [0], [1], [0, 0, 1, 1], [], []>} : vector<16x256xf32>, vector<256x128xf32>, vector<16x128xf32> -> vector<16x128xf32>
      %c0_21 = arith.constant 0 : index
      %c0_22 = arith.constant 0 : index
      %22 = vector.load %arg9[%c0_21, %c0_22] : memref<1x128xf32, #tpu.memory_space<vmem>>, vector<1x128xf32>
      %23 = vector.broadcast %22 : vector<1x128xf32> to vector<16x128xf32>
      %24 = arith.addf %21, %23 : vector<16x128xf32>
      %c0_23 = arith.constant 0 : index
      %c0_24 = arith.constant 0 : index
      %25 = vector.load %arg10[%c0_23, %c0_24] : memref<16x128xf32, #tpu.memory_space<vmem>>, vector<16x128xf32>
      tpu.vector_store %arg10[%c0_23, %c0_24], %24 {strides = array<i32>} : memref<16x128xf32, #tpu.memory_space<vmem>>, vector<16x128xf32>,
    } else {
    }
    return
  }
  func.func @transform_0(%arg0: i32, %arg1: i32) -> (i32, i32) {
    %c0_i32 = arith.constant 0 : i32
    return %arg0, %arg1 : i32, i32
  }
  func.func @transform_1(%arg0: i32, %arg1: i32) -> (i32, i32) {
    %c0_i32 = arith.constant 0 : i32
    %c0_i32_0 = arith.constant 0 : i32
    return %arg1, %c0_i32 : i32, i32
  }
  func.func @transform_2(%arg0: i32, %arg1: i32) -> (i32, i32) {
    %c0_i32 = arith.constant 0 : i32
    %c0_i32_0 = arith.constant 0 : i32
    return %arg0, %c0_i32 : i32, i32
  }
  func.func @transform_3(%arg0: i32, %arg1: i32) -> (i32, i32) {
    %c0_i32 = arith.constant 0 : i32
    %c0_i32_0 = arith.constant 0 : i32
    %c0_i32_1 = arith.constant 0 : i32
    return %c0_i32, %c0_i32_0 : i32, i32
  }
  func.func @transform_4(%arg0: i32, %arg1: i32) -> (i32, i32) {
    %c0_i32 = arith.constant 0 : i32
    %c0_i32_0 = arith.constant 0 : i32
    %c0_i32_1 = arith.constant 0 : i32
    return %c0_i32, %c0_i32_0 : i32, i32
  }
  func.func @transform_5(%arg0: i32, %arg1: i32) -> (i32, i32) {
    %c0_i32 = arith.constant 0 : i32
    %c0_i32_0 = arith.constant 0 : i32
    %c0_i32_1 = arith.constant 0 : i32
    return %c0_i32, %c0_i32_0 : i32, i32
  }
  func.func @transform_6(%arg0: i32, %arg1: i32) -> (i32, i32) {
    %c0_i32 = arith.constant 0 : i32
    %c0_i32_0 = arith.constant 0 : i32
    %c0_i32_1 = arith.constant 0 : i32
    return %c0_i32, %c0_i32_0 : i32, i32
  }
  func.func @transform_7(%arg0: i32, %arg1: i32) -> (i32, i32) {
    %c0_i32 = arith.constant 0 : i32
    %c0_i32_0 = arith.constant 0 : i32
    %c0_i32_1 = arith.constant 0 : i32
    return %c0_i32, %c0_i32_0 : i32, i32
  }
  func.func @transform_8(%arg0: i32, %arg1: i32) -> (i32, i32) {
    %c0_i32 = arith.constant 0 : i32
    %c0_i32_0 = arith.constant 0 : i32
    return %arg0, %c0_i32 : i32, i32
  }
}

module attributes {stable_mosaic.version = 11 : i64} {
  func.func @_bn_act_kernel(%arg0: i32, %arg1: memref<16x128xf32, #tpu.memory_space<vmem>>, %arg2: memref<1x128xf32, #tpu.memory_space<vmem>>, %arg3: memref<1x128xf32, #tpu.memory_space<vmem>>, %arg4: memref<1x128xf32, #tpu.memory_space<vmem>>, %arg5: memref<1x128xf32, #tpu.memory_space<vmem>>, %arg6: memref<16x128xf32, #tpu.memory_space<vmem>>) attributes {dimension_semantics = [#tpu.dimension_semantics<parallel>], iteration_bounds = array<i64: 1>, scalar_prefetch = 0 : i64, scratch_operands = 0 : i64, tpu.core_type = #tpu.core_type<tc>, window_params = [{transform_indices = @transform_0, window_bounds = array<i64: 16, 128>}, {pipeline_mode = #tpu.pipeline_mode<synchronous>, transform_indices = @transform_1, window_bounds = array<i64: 1, 128>}, {pipeline_mode = #tpu.pipeline_mode<synchronous>, transform_indices = @transform_2, window_bounds = array<i64: 1, 128>}, {pipeline_mode = #tpu.pipeline_mode<synchronous>, transform_indices = @transform_3, window_bounds = array<i64: 1, 128>}, {pipeline_mode = #tpu.pipeline_mode<synchronous>, transform_indices = @transform_4, window_bounds = array<i64: 1, 128>}, {transform_indices = @transform_5, window_bounds = array<i64: 16, 128>}]} {
    %c0 = arith.constant 0 : index
    %c0_0 = arith.constant 0 : index
    %0 = vector.load %arg1[%c0, %c0_0] : memref<16x128xf32, #tpu.memory_space<vmem>>, vector<16x128xf32>
    %c0_1 = arith.constant 0 : index
    %c0_2 = arith.constant 0 : index
    %1 = vector.load %arg2[%c0_1, %c0_2] : memref<1x128xf32, #tpu.memory_space<vmem>>, vector<1x128xf32>
    %2 = vector.broadcast %1 : vector<1x128xf32> to vector<16x128xf32>
    %3 = arith.subf %0, %2 : vector<16x128xf32>
    %c0_3 = arith.constant 0 : index
    %c0_4 = arith.constant 0 : index
    %4 = vector.load %arg3[%c0_3, %c0_4] : memref<1x128xf32, #tpu.memory_space<vmem>>, vector<1x128xf32>
    %c0_5 = arith.constant 0 : index
    %c0_6 = arith.constant 0 : index
    %5 = vector.load %arg4[%c0_5, %c0_6] : memref<1x128xf32, #tpu.memory_space<vmem>>, vector<1x128xf32>
    %6 = arith.mulf %4, %5 : vector<1x128xf32>
    %7 = vector.broadcast %6 : vector<1x128xf32> to vector<16x128xf32>
    %8 = arith.mulf %3, %7 : vector<16x128xf32>
    %c0_7 = arith.constant 0 : index
    %c0_8 = arith.constant 0 : index
    %9 = vector.load %arg5[%c0_7, %c0_8] : memref<1x128xf32, #tpu.memory_space<vmem>>, vector<1x128xf32>
    %10 = vector.broadcast %9 : vector<1x128xf32> to vector<16x128xf32>
    %11 = arith.addf %8, %10 : vector<16x128xf32>
    %c0_9 = arith.constant 0 : index
    %c0_10 = arith.constant 0 : index
    %12 = vector.load %arg6[%c0_9, %c0_10] : memref<16x128xf32, #tpu.memory_space<vmem>>, vector<16x128xf32>
    tpu.vector_store %arg6[%c0_9, %c0_10], %11 {strides = array<i32>} : memref<16x128xf32, #tpu.memory_space<vmem>>, vector<16x128xf32>,
    return
  }
  func.func @transform_0(%arg0: i32) -> (i32, i32) {
    %c0_i32 = arith.constant 0 : i32
    %c0_i32_0 = arith.constant 0 : i32
    return %arg0, %c0_i32 : i32, i32
  }
  func.func @transform_1(%arg0: i32) -> (i32, i32) {
    %c0_i32 = arith.constant 0 : i32
    %c0_i32_0 = arith.constant 0 : i32
    %c0_i32_1 = arith.constant 0 : i32
    return %c0_i32, %c0_i32_0 : i32, i32
  }
  func.func @transform_2(%arg0: i32) -> (i32, i32) {
    %c0_i32 = arith.constant 0 : i32
    %c0_i32_0 = arith.constant 0 : i32
    %c0_i32_1 = arith.constant 0 : i32
    return %c0_i32, %c0_i32_0 : i32, i32
  }
  func.func @transform_3(%arg0: i32) -> (i32, i32) {
    %c0_i32 = arith.constant 0 : i32
    %c0_i32_0 = arith.constant 0 : i32
    %c0_i32_1 = arith.constant 0 : i32
    return %c0_i32, %c0_i32_0 : i32, i32
  }
  func.func @transform_4(%arg0: i32) -> (i32, i32) {
    %c0_i32 = arith.constant 0 : i32
    %c0_i32_0 = arith.constant 0 : i32
    %c0_i32_1 = arith.constant 0 : i32
    return %c0_i32, %c0_i32_0 : i32, i32
  }
  func.func @transform_5(%arg0: i32) -> (i32, i32) {
    %c0_i32 = arith.constant 0 : i32
    %c0_i32_0 = arith.constant 0 : i32
    return %arg0, %c0_i32 : i32, i32
  }
}

module attributes {stable_mosaic.version = 11 : i64} {
  func.func @_gin_aggr_mlp_kernel(%arg0: i32, %arg1: i32, %arg2: memref<16x16xbf16, #tpu.memory_space<vmem>>, %arg3: memref<16x128xbf16, #tpu.memory_space<vmem>>, %arg4: memref<16x16xf32, #tpu.memory_space<vmem>>, %arg5: memref<16x128xf32, #tpu.memory_space<vmem>>, %arg6: memref<128x256xf32, #tpu.memory_space<vmem>>, %arg7: memref<1x256xf32, #tpu.memory_space<vmem>>, %arg8: memref<256x128xf32, #tpu.memory_space<vmem>>, %arg9: memref<1x128xf32, #tpu.memory_space<vmem>>, %arg10: memref<16x128xf32, #tpu.memory_space<vmem>>, %arg11: memref<16x128xf32, #tpu.memory_space<vmem>>) attributes {dimension_semantics = [#tpu.dimension_semantics<parallel>, #tpu.dimension_semantics<arbitrary>], iteration_bounds = array<i64: 1, 1>, scalar_prefetch = 0 : i64, scratch_operands = 1 : i64, tpu.core_type = #tpu.core_type<tc>, window_params = [{transform_indices = @transform_0, window_bounds = array<i64: 16, 16>}, {transform_indices = @transform_1, window_bounds = array<i64: 16, 128>}, {transform_indices = @transform_2, window_bounds = array<i64: 16, 16>}, {pipeline_mode = #tpu.pipeline_mode<synchronous>, transform_indices = @transform_3, window_bounds = array<i64: 16, 128>}, {pipeline_mode = #tpu.pipeline_mode<synchronous>, transform_indices = @transform_4, window_bounds = array<i64: 128, 256>}, {pipeline_mode = #tpu.pipeline_mode<synchronous>, transform_indices = @transform_5, window_bounds = array<i64: 1, 256>}, {pipeline_mode = #tpu.pipeline_mode<synchronous>, transform_indices = @transform_6, window_bounds = array<i64: 256, 128>}, {pipeline_mode = #tpu.pipeline_mode<synchronous>, transform_indices = @transform_7, window_bounds = array<i64: 1, 128>}, {transform_indices = @transform_8, window_bounds = array<i64: 16, 128>}]} {
    %c0_i32 = arith.constant 0 : i32
    %0 = arith.cmpi eq, %arg1, %c0_i32 : i32
    %1 = arith.extui %0 : i1 to i32
    %c0_i32_0 = arith.constant 0 : i32
    %2 = arith.cmpi ne, %1, %c0_i32_0 : i32
    scf.if %2 {
      %c0_10 = arith.constant 0 : index
      %c0_11 = arith.constant 0 : index
      %12 = vector.load %arg4[%c0_10, %c0_11] : memref<16x16xf32, #tpu.memory_space<vmem>>, vector<16x16xf32>
      %c0_12 = arith.constant 0 : index
      %c0_13 = arith.constant 0 : index
      %13 = vector.load %arg5[%c0_12, %c0_13] : memref<16x128xf32, #tpu.memory_space<vmem>>, vector<16x128xf32>
      %cst_14 = arith.constant dense<0.000000e+00> : vector<16x128xf32>
      %14 = tpu.matmul %12, %13, %cst_14 {dimension_numbers = #tpu.dot_dimension_numbers<[1], [0], [0], [1], [0, 0, 1, 1], [], []>} : vector<16x16xf32>, vector<16x128xf32>, vector<16x128xf32> -> vector<16x128xf32>
      %c0_15 = arith.constant 0 : index
      %c0_16 = arith.constant 0 : index
      %15 = vector.load %arg11[%c0_15, %c0_16] : memref<16x128xf32, #tpu.memory_space<vmem>>, vector<16x128xf32>
      tpu.vector_store %arg11[%c0_15, %c0_16], %14 {strides = array<i32>} : memref<16x128xf32, #tpu.memory_space<vmem>>, vector<16x128xf32>,
    } else {
    }
    %c0 = arith.constant 0 : index
    %c0_1 = arith.constant 0 : index
    %3 = vector.load %arg11[%c0, %c0_1] : memref<16x128xf32, #tpu.memory_space<vmem>>, vector<16x128xf32>
    %c0_2 = arith.constant 0 : index
    %c0_3 = arith.constant 0 : index
    %4 = vector.load %arg2[%c0_2, %c0_3] : memref<16x16xbf16, #tpu.memory_space<vmem>>, vector<16x16xbf16>
    %c0_4 = arith.constant 0 : index
    %c0_5 = arith.constant 0 : index
    %5 = vector.load %arg3[%c0_4, %c0_5] : memref<16x128xbf16, #tpu.memory_space<vmem>>, vector<16x128xbf16>
    %cst = arith.constant dense<0.000000e+00> : vector<16x128xf32>
    %6 = tpu.matmul %4, %5, %cst {dimension_numbers = #tpu.dot_dimension_numbers<[1], [0], [0], [1], [0, 0, 1, 1], [], []>} : vector<16x16xbf16>, vector<16x128xbf16>, vector<16x128xf32> -> vector<16x128xf32>
    %7 = arith.addf %3, %6 : vector<16x128xf32>
    %c0_6 = arith.constant 0 : index
    %c0_7 = arith.constant 0 : index
    %8 = vector.load %arg11[%c0_6, %c0_7] : memref<16x128xf32, #tpu.memory_space<vmem>>, vector<16x128xf32>
    tpu.vector_store %arg11[%c0_6, %c0_7], %7 {strides = array<i32>} : memref<16x128xf32, #tpu.memory_space<vmem>>, vector<16x128xf32>,
    %c0_i32_8 = arith.constant 0 : i32
    %9 = arith.cmpi eq, %arg1, %c0_i32_8 : i32
    %10 = arith.extui %9 : i1 to i32
    %c0_i32_9 = arith.constant 0 : i32
    %11 = arith.cmpi ne, %10, %c0_i32_9 : i32
    scf.if %11 {
      %c0_10 = arith.constant 0 : index
      %c0_11 = arith.constant 0 : index
      %12 = vector.load %arg11[%c0_10, %c0_11] : memref<16x128xf32, #tpu.memory_space<vmem>>, vector<16x128xf32>
      %c0_12 = arith.constant 0 : index
      %c0_13 = arith.constant 0 : index
      %13 = vector.load %arg6[%c0_12, %c0_13] : memref<128x256xf32, #tpu.memory_space<vmem>>, vector<128x256xf32>
      %cst_14 = arith.constant dense<0.000000e+00> : vector<16x256xf32>
      %14 = tpu.matmul %12, %13, %cst_14 {dimension_numbers = #tpu.dot_dimension_numbers<[1], [0], [0], [1], [0, 0, 1, 1], [], []>} : vector<16x128xf32>, vector<128x256xf32>, vector<16x256xf32> -> vector<16x256xf32>
      %c0_15 = arith.constant 0 : index
      %c0_16 = arith.constant 0 : index
      %15 = vector.load %arg7[%c0_15, %c0_16] : memref<1x256xf32, #tpu.memory_space<vmem>>, vector<1x256xf32>
      %16 = vector.broadcast %15 : vector<1x256xf32> to vector<16x256xf32>
      %17 = arith.addf %14, %16 : vector<16x256xf32>
      %cst_17 = arith.constant 0.000000e+00 : f32
      %18 = vector.broadcast %cst_17 : f32 to vector<16x256xf32>
      %19 = arith.maximumf %17, %18 : vector<16x256xf32>
      %c0_18 = arith.constant 0 : index
      %c0_19 = arith.constant 0 : index
      %20 = vector.load %arg8[%c0_18, %c0_19] : memref<256x128xf32, #tpu.memory_space<vmem>>, vector<256x128xf32>
      %cst_20 = arith.constant dense<0.000000e+00> : vector<16x128xf32>
      %21 = tpu.matmul %19, %20, %cst_20 {dimension_numbers = #tpu.dot_dimension_numbers<[1], [0], [0], [1], [0, 0, 1, 1], [], []>} : vector<16x256xf32>, vector<256x128xf32>, vector<16x128xf32> -> vector<16x128xf32>
      %c0_21 = arith.constant 0 : index
      %c0_22 = arith.constant 0 : index
      %22 = vector.load %arg9[%c0_21, %c0_22] : memref<1x128xf32, #tpu.memory_space<vmem>>, vector<1x128xf32>
      %23 = vector.broadcast %22 : vector<1x128xf32> to vector<16x128xf32>
      %24 = arith.addf %21, %23 : vector<16x128xf32>
      %c0_23 = arith.constant 0 : index
      %c0_24 = arith.constant 0 : index
      %25 = vector.load %arg10[%c0_23, %c0_24] : memref<16x128xf32, #tpu.memory_space<vmem>>, vector<16x128xf32>
      tpu.vector_store %arg10[%c0_23, %c0_24], %24 {strides = array<i32>} : memref<16x128xf32, #tpu.memory_space<vmem>>, vector<16x128xf32>,
    } else {
    }
    return
  }
  func.func @transform_0(%arg0: i32, %arg1: i32) -> (i32, i32) {
    %c0_i32 = arith.constant 0 : i32
    return %arg0, %arg1 : i32, i32
  }
  func.func @transform_1(%arg0: i32, %arg1: i32) -> (i32, i32) {
    %c0_i32 = arith.constant 0 : i32
    %c0_i32_0 = arith.constant 0 : i32
    return %arg1, %c0_i32 : i32, i32
  }
  func.func @transform_2(%arg0: i32, %arg1: i32) -> (i32, i32) {
    %c0_i32 = arith.constant 0 : i32
    %c0_i32_0 = arith.constant 0 : i32
    return %arg0, %c0_i32 : i32, i32
  }
  func.func @transform_3(%arg0: i32, %arg1: i32) -> (i32, i32) {
    %c0_i32 = arith.constant 0 : i32
    %c0_i32_0 = arith.constant 0 : i32
    %c0_i32_1 = arith.constant 0 : i32
    return %c0_i32, %c0_i32_0 : i32, i32
  }
  func.func @transform_4(%arg0: i32, %arg1: i32) -> (i32, i32) {
    %c0_i32 = arith.constant 0 : i32
    %c0_i32_0 = arith.constant 0 : i32
    %c0_i32_1 = arith.constant 0 : i32
    return %c0_i32, %c0_i32_0 : i32, i32
  }
  func.func @transform_5(%arg0: i32, %arg1: i32) -> (i32, i32) {
    %c0_i32 = arith.constant 0 : i32
    %c0_i32_0 = arith.constant 0 : i32
    %c0_i32_1 = arith.constant 0 : i32
    return %c0_i32, %c0_i32_0 : i32, i32
  }
  func.func @transform_6(%arg0: i32, %arg1: i32) -> (i32, i32) {
    %c0_i32 = arith.constant 0 : i32
    %c0_i32_0 = arith.constant 0 : i32
    %c0_i32_1 = arith.constant 0 : i32
    return %c0_i32, %c0_i32_0 : i32, i32
  }
  func.func @transform_7(%arg0: i32, %arg1: i32) -> (i32, i32) {
    %c0_i32 = arith.constant 0 : i32
    %c0_i32_0 = arith.constant 0 : i32
    %c0_i32_1 = arith.constant 0 : i32
    return %c0_i32, %c0_i32_0 : i32, i32
  }
  func.func @transform_8(%arg0: i32, %arg1: i32) -> (i32, i32) {
    %c0_i32 = arith.constant 0 : i32
    %c0_i32_0 = arith.constant 0 : i32
    return %arg0, %c0_i32 : i32, i32
  }
}

module attributes {stable_mosaic.version = 11 : i64} {
  func.func @_bn_act_kernel(%arg0: i32, %arg1: memref<16x128xf32, #tpu.memory_space<vmem>>, %arg2: memref<1x128xf32, #tpu.memory_space<vmem>>, %arg3: memref<1x128xf32, #tpu.memory_space<vmem>>, %arg4: memref<1x128xf32, #tpu.memory_space<vmem>>, %arg5: memref<1x128xf32, #tpu.memory_space<vmem>>, %arg6: memref<16x128xf32, #tpu.memory_space<vmem>>) attributes {dimension_semantics = [#tpu.dimension_semantics<parallel>], iteration_bounds = array<i64: 1>, scalar_prefetch = 0 : i64, scratch_operands = 0 : i64, tpu.core_type = #tpu.core_type<tc>, window_params = [{transform_indices = @transform_0, window_bounds = array<i64: 16, 128>}, {pipeline_mode = #tpu.pipeline_mode<synchronous>, transform_indices = @transform_1, window_bounds = array<i64: 1, 128>}, {pipeline_mode = #tpu.pipeline_mode<synchronous>, transform_indices = @transform_2, window_bounds = array<i64: 1, 128>}, {pipeline_mode = #tpu.pipeline_mode<synchronous>, transform_indices = @transform_3, window_bounds = array<i64: 1, 128>}, {pipeline_mode = #tpu.pipeline_mode<synchronous>, transform_indices = @transform_4, window_bounds = array<i64: 1, 128>}, {transform_indices = @transform_5, window_bounds = array<i64: 16, 128>}]} {
    %c0 = arith.constant 0 : index
    %c0_0 = arith.constant 0 : index
    %0 = vector.load %arg1[%c0, %c0_0] : memref<16x128xf32, #tpu.memory_space<vmem>>, vector<16x128xf32>
    %c0_1 = arith.constant 0 : index
    %c0_2 = arith.constant 0 : index
    %1 = vector.load %arg2[%c0_1, %c0_2] : memref<1x128xf32, #tpu.memory_space<vmem>>, vector<1x128xf32>
    %2 = vector.broadcast %1 : vector<1x128xf32> to vector<16x128xf32>
    %3 = arith.subf %0, %2 : vector<16x128xf32>
    %c0_3 = arith.constant 0 : index
    %c0_4 = arith.constant 0 : index
    %4 = vector.load %arg3[%c0_3, %c0_4] : memref<1x128xf32, #tpu.memory_space<vmem>>, vector<1x128xf32>
    %c0_5 = arith.constant 0 : index
    %c0_6 = arith.constant 0 : index
    %5 = vector.load %arg4[%c0_5, %c0_6] : memref<1x128xf32, #tpu.memory_space<vmem>>, vector<1x128xf32>
    %6 = arith.mulf %4, %5 : vector<1x128xf32>
    %7 = vector.broadcast %6 : vector<1x128xf32> to vector<16x128xf32>
    %8 = arith.mulf %3, %7 : vector<16x128xf32>
    %c0_7 = arith.constant 0 : index
    %c0_8 = arith.constant 0 : index
    %9 = vector.load %arg5[%c0_7, %c0_8] : memref<1x128xf32, #tpu.memory_space<vmem>>, vector<1x128xf32>
    %10 = vector.broadcast %9 : vector<1x128xf32> to vector<16x128xf32>
    %11 = arith.addf %8, %10 : vector<16x128xf32>
    %cst = arith.constant 0.000000e+00 : f32
    %12 = vector.broadcast %cst : f32 to vector<16x128xf32>
    %13 = arith.maximumf %11, %12 : vector<16x128xf32>
    %c0_9 = arith.constant 0 : index
    %c0_10 = arith.constant 0 : index
    %14 = vector.load %arg6[%c0_9, %c0_10] : memref<16x128xf32, #tpu.memory_space<vmem>>, vector<16x128xf32>
    tpu.vector_store %arg6[%c0_9, %c0_10], %13 {strides = array<i32>} : memref<16x128xf32, #tpu.memory_space<vmem>>, vector<16x128xf32>,
    return
  }
  func.func @transform_0(%arg0: i32) -> (i32, i32) {
    %c0_i32 = arith.constant 0 : i32
    %c0_i32_0 = arith.constant 0 : i32
    return %arg0, %c0_i32 : i32, i32
  }
  func.func @transform_1(%arg0: i32) -> (i32, i32) {
    %c0_i32 = arith.constant 0 : i32
    %c0_i32_0 = arith.constant 0 : i32
    %c0_i32_1 = arith.constant 0 : i32
    return %c0_i32, %c0_i32_0 : i32, i32
  }
  func.func @transform_2(%arg0: i32) -> (i32, i32) {
    %c0_i32 = arith.constant 0 : i32
    %c0_i32_0 = arith.constant 0 : i32
    %c0_i32_1 = arith.constant 0 : i32
    return %c0_i32, %c0_i32_0 : i32, i32
  }
  func.func @transform_3(%arg0: i32) -> (i32, i32) {
    %c0_i32 = arith.constant 0 : i32
    %c0_i32_0 = arith.constant 0 : i32
    %c0_i32_1 = arith.constant 0 : i32
    return %c0_i32, %c0_i32_0 : i32, i32
  }
  func.func @transform_4(%arg0: i32) -> (i32, i32) {
    %c0_i32 = arith.constant 0 : i32
    %c0_i32_0 = arith.constant 0 : i32
    %c0_i32_1 = arith.constant 0 : i32
    return %c0_i32, %c0_i32_0 : i32, i32
  }
  func.func @transform_5(%arg0: i32) -> (i32, i32) {
    %c0_i32 = arith.constant 0 : i32
    %c0_i32_0 = arith.constant 0 : i32
    return %arg0, %c0_i32 : i32, i32
  }
}

</mosaic_0001>

<bundles_post_ra>
// kernel: gnn_forward.7
= control target key start
LH: loop header
LB: loop body
LE: loop exit
PB: predicated region body
PF: predicated region fallthrough
CT: control target
= control target key end

     0   :  { %v35_v0 = vlaneseq  ;;  %s113_s0 = inlined_call_operand.vmem [shape: f32[16,128], index: 0, kind: input, shape index: {}]   ;;  %s114_s1 = inlined_call_operand.vmem [shape: f32[1,128], index: 1, kind: input, shape index: {}]   ;;  %s115_s2 = inlined_call_operand.vmem [shape: f32[1,128], index: 2, kind: input, shape index: {}]   ;;  %s116_s3 = inlined_call_operand.vmem [shape: f32[1,128], index: 3, kind: input, shape index: {}]   ;;  %s117_s4 = inlined_call_operand.vmem [shape: f32[1,128], index: 4, kind: input, shape index: {}]   ;;  %s118_s5 = inlined_call_operand.vmem [shape: f32[16,128], index: 5, kind: output, shape index: {}]  }
   0x1   :  { %v20_v1 = vld [vmem:[%s113_s0] sm:$0xff]  ;;  %v21_v6 = vld [vmem:[%s113_s0 + $0x8] sm:$0xff] }
   0x2   :  { %v57_v2 = vld [vmem:[%s114_s1] ss:$0 sm:$0xff]  ;;  %v36_v5 = vshrl.u32 %v35_v0, 7 }
   0x3   :  { %v31_v3 = vld [vmem:[%s115_s2] sm:$0x1]  ;;  %v29_v8 = vsub.f32 %v20_v1, %v57_v2  ;;  %v30_v10 = vsub.f32 %v21_v6, %v57_v2 }
   0x4   :  { %v32_v4 = vld [vmem:[%s116_s3] sm:$0x1]  ;;  %v37_v9 = vsub.s32 0, %v36_v5 }
   0x5   :  { %v33_v7 = vmul.f32 %v32_v4, %v31_v3  ;;  %v58_v12 = vld [vmem:[%s117_s4] ss:$0 sm:$0xff] }
   0x7   :  { %v38_v11 = vrot.slane %v33_v7, %v37_v9 }
   0x9   :  { %v40_v13 = vmul.f32 %v38_v11, %v29_v8  ;;  %v41_v14 = vmul.f32 %v38_v11, %v30_v10 }
   0xb   :  { %v49_v15 = vadd.f32 %v58_v12, %v40_v13  ;;  %v50_v16 = vadd.f32 %v58_v12, %v41_v14 }
   0xd   :  { %51 = vst [vmem:[%s118_s5] sm:$0xff] %v49_v15  ;;  %52 = vst [vmem:[%s118_s5 + $0x8] sm:$0xff] %v50_v16 }

// kernel: gnn_forward.5
= control target key start
LH: loop header
LB: loop body
LE: loop exit
PB: predicated region body
PF: predicated region fallthrough
CT: control target
= control target key end

     0   :  { %v35_v0 = vlaneseq  ;;  %s115_s0 = inlined_call_operand.vmem [shape: f32[16,128], index: 0, kind: input, shape index: {}]   ;;  %s116_s1 = inlined_call_operand.vmem [shape: f32[1,128], index: 1, kind: input, shape index: {}]   ;;  %s117_s2 = inlined_call_operand.vmem [shape: f32[1,128], index: 2, kind: input, shape index: {}]   ;;  %s118_s3 = inlined_call_operand.vmem [shape: f32[1,128], index: 3, kind: input, shape index: {}]   ;;  %s119_s4 = inlined_call_operand.vmem [shape: f32[1,128], index: 4, kind: input, shape index: {}]   ;;  %s120_s5 = inlined_call_operand.vmem [shape: f32[16,128], index: 5, kind: output, shape index: {}]  }
   0x1   :  { %v20_v1 = vld [vmem:[%s115_s0] sm:$0xff]  ;;  %v21_v6 = vld [vmem:[%s115_s0 + $0x8] sm:$0xff] }
   0x2   :  { %v59_v2 = vld [vmem:[%s116_s1] ss:$0 sm:$0xff]  ;;  %v36_v5 = vshrl.u32 %v35_v0, 7 }
   0x3   :  { %v31_v3 = vld [vmem:[%s117_s2] sm:$0x1]  ;;  %v29_v8 = vsub.f32 %v20_v1, %v59_v2  ;;  %v30_v10 = vsub.f32 %v21_v6, %v59_v2 }
   0x4   :  { %v32_v4 = vld [vmem:[%s118_s3] sm:$0x1]  ;;  %v37_v9 = vsub.s32 0, %v36_v5 }
   0x5   :  { %v33_v7 = vmul.f32 %v32_v4, %v31_v3  ;;  %v60_v12 = vld [vmem:[%s119_s4] ss:$0 sm:$0xff] }
   0x7   :  { %v38_v11 = vrot.slane %v33_v7, %v37_v9 }
   0x9   :  { %v40_v13 = vmul.f32 %v38_v11, %v29_v8  ;;  %v41_v14 = vmul.f32 %v38_v11, %v30_v10 }
   0xb   :  { %v49_v15 = vadd.f32 %v60_v12, %v40_v13  ;;  %v50_v16 = vadd.f32 %v60_v12, %v41_v14 }
   0xd   :  { %v51_v17 = vmax.f32 %v49_v15, 0.0  ;;  %v52_v18 = vmax.f32 %v50_v16, 0.0 }
   0xf   :  { %53 = vst [vmem:[%s120_s5] sm:$0xff] %v51_v17  ;;  %54 = vst [vmem:[%s120_s5 + $0x8] sm:$0xff] %v52_v18 }

// kernel: gnn_forward.6
= control target key start
LH: loop header
LB: loop body
LE: loop exit
PB: predicated region body
PF: predicated region fallthrough
CT: control target
= control target key end

     0   :  { %vm38_vm0 = vcmask 130048   ;;  %v505_v1 = vmov 0.0   ;;  %vm506_vm1 = vmmov 0   ;;  %s781_s3 = inlined_call_operand.vmem [shape: f32[16,128], index: 3, kind: input, shape index: {}]   ;;  %s782_s1 = inlined_call_operand.vmem [shape: bf16[16,128], index: 1, kind: input, shape index: {}]   ;;  %s783_s2 = inlined_call_operand.vmem [shape: f32[16,16], index: 2, kind: input, shape index: {}]   ;;  %s784_s0 = inlined_call_operand.vmem [shape: bf16[16,16], index: 0, kind: input, shape index: {}]   ;;  %s785_s4 = inlined_call_operand.vmem [shape: f32[128,256], index: 4, kind: input, shape index: {}]   ;;  %s786_s6 = inlined_call_operand.vmem [shape: f32[256,128], index: 6, kind: input, shape index: {}]   ;;  %s787_s5 = inlined_call_operand.vmem [shape: f32[1,256], index: 5, kind: input, shape index: {}]   ;;  %s788_s7 = inlined_call_operand.vmem [shape: f32[1,128], index: 7, kind: input, shape index: {}]   ;;  %s789_s8 = inlined_call_operand.vmem [shape: f32[16,128], index: 8, kind: output, shape index: {}]  }
   0x1   :  { %v37_v0 = vld [vmem:[%s781_s3 + $0x8] sm:$0xff]  ;;  %495 = vmatprep.subr.bf16.mxu1 %v505_v1  ;;  %v36_v2 = vld [vmem:[%s781_s3] sm:$0xff]  ;;  %497 = vmatprep.mubr.msk.bf16.mxu1 %vm506_vm1, %v505_v1  ;;  %v224_v7 = vld [vmem:[%s785_s4 + $0xf8] sm:$0xff] }
   0x2   :  { %488 = vmatprep.subr.mxu0 %v37_v0  ;;  %v503_v3 = vld [vmem:[%s782_s1] sm:$0xff]   ;;  %v35_v5 = vld [vmem:[%s783_s2 + $0x8] sm:$0xff]  ;;  %v223_v8 = vld [vmem:[%s785_s4 + $0xf0] sm:$0xff] }
   0x3   :  { %v34_v4 = vld [vmem:[%s783_s2] sm:$0xff]  ;;  %489 = vmatpush3.msra.mxu0 %v37_v0  ;;  %496 = vmatpush3.bf16.msra.mxu1 %v503_v3  ;;  %v222_v9 = vld [vmem:[%s785_s4 + $0xe8] sm:$0xff]  ;;  %v220_v11 = vld [vmem:[%s785_s4 + $0xd8] sm:$0xff] }
   0x4   :  { %492 = vmatprep.mubr.msk.f32.mxu0 %vm38_vm0, %v34_v4  ;;  %490 = vmatprep.subr.mxu0 %v36_v2  ;;  %v504_v6 = vld [vmem:[%s784_s0] sm:$0xff]   ;;  %v219_v12 = vld [vmem:[%s785_s4 + $0xd0] sm:$0xff]  ;;  %v218_v13 = vld [vmem:[%s785_s4 + $0xc8] sm:$0xff] }
   0x5   :  { %491 = vmatpush3.msra.mxu0 %v36_v2  ;;  %v221_v10 = vld [vmem:[%s785_s4 + $0xe0] sm:$0xff]  ;;  %v216_v15 = vld [vmem:[%s785_s4 + $0xb8] sm:$0xff]  ;;  %v215_v16 = vld [vmem:[%s785_s4 + $0xb0] sm:$0xff] }
   0x6   :  { %493 = vmatmul.mubr.msk.f32.vlgmr.msra.gmra.mxu0 %vm38_vm0, %v35_v5  ;;  %237 = vmatprep.subr.mxu0 %v224_v7  ;;  %v217_v14 = vld [vmem:[%s785_s4 + $0xc0] sm:$0xff]  ;;  %v214_v17 = vld [vmem:[%s785_s4 + $0xa8] sm:$0xff]  ;;  %v212_v19 = vld [vmem:[%s785_s4 + $0x98] sm:$0xff] }
   0x7   :  { %498 = vmatmul.mubr.msk.bf16.vlgmr.msra.gmra.mxu1 %vm38_vm0, %v504_v6  ;;  %238 = vmatpush1.msra.mxu0 %v223_v8  ;;  %v213_v18 = vld [vmem:[%s785_s4 + $0xa0] sm:$0xff]  ;;  %v211_v20 = vld [vmem:[%s785_s4 + $0x90] sm:$0xff]  ;;  %v210_v21 = vld [vmem:[%s785_s4 + $0x88] sm:$0xff] }
   0x8   :  { %239 = vmatprep.subr.mxu0 %v222_v9  ;;  %301 = vmatprep.mubr.f32.mxu0 %v505_v1  ;;  %v209_v22 = vld [vmem:[%s785_s4 + $0x80] sm:$0xff]  ;;  %v208_v23 = vld [vmem:[%s785_s4 + $0x78] sm:$0xff]  ;;  %v207_v24 = vld [vmem:[%s785_s4 + $0x70] sm:$0xff] }
   0x9   :  { %240 = vmatpush1.msra.mxu0 %v221_v10  ;;  %v206_v25 = vld [vmem:[%s785_s4 + $0x68] sm:$0xff]  ;;  %v205_v26 = vld [vmem:[%s785_s4 + $0x60] sm:$0xff]  ;;  %v204_v27 = vld [vmem:[%s785_s4 + $0x58] sm:$0xff] }
   0xa   :  { %241 = vmatprep.subr.mxu0 %v220_v11  ;;  %v203_v28 = vld [vmem:[%s785_s4 + $0x50] sm:$0xff]  ;;  %v202_v29 = vld [vmem:[%s785_s4 + $0x48] sm:$0xff]  ;;  %v201_v30 = vld [vmem:[%s785_s4 + $0x40] sm:$0xff] }
   0xb   :  { %242 = vmatpush1.msra.mxu0 %v219_v12  ;;  %v200_v31 = vld [vmem:[%s785_s4 + $0x38] sm:$0xff]  ;;  %v199_v32 = vld [vmem:[%s785_s4 + $0x30] sm:$0xff]  ;;  %v198_v33 = vld [vmem:[%s785_s4 + $0x28] sm:$0xff] }
   0xc   :  { %243 = vmatprep.subr.mxu0 %v218_v13  ;;  %v197_v34 = vld [vmem:[%s785_s4 + $0x20] sm:$0xff]  ;;  %v196_v35 = vld [vmem:[%s785_s4 + $0x18] sm:$0xff]  ;;  %v195_v36 = vld [vmem:[%s785_s4 + $0x10] sm:$0xff] }
   0xd   :  { %244 = vmatpush1.msra.mxu0 %v217_v14  ;;  %v194_v37 = vld [vmem:[%s785_s4 + $0x8] sm:$0xff]  ;;  %v193_v38 = vld [vmem:[%s785_s4] sm:$0xff]  ;;  %v349_v39 = vld [vmem:[%s786_s6 + $0xf8] sm:$0xff] }
   0xe   :  { %245 = vmatprep.subr.mxu0 %v216_v15  ;;  %v333_v40 = vld [vmem:[%s786_s6 + $0x78] sm:$0xff]  ;;  %v348_v41 = vld [vmem:[%s786_s6 + $0xf0] sm:$0xff]  ;;  %450 = vmatprep.subr.mxu1 %v349_v39  ;;  %v347_v43 = vld [vmem:[%s786_s6 + $0xe8] sm:$0xff]  ;;  %v227_v15 = vlaneseq }
   0xf   :  { %246 = vmatpush1.msra.mxu0 %v215_v16  ;;  %v332_v42 = vld [vmem:[%s786_s6 + $0x70] sm:$0xff]  ;;  %451 = vmatpush3.msra.mxu1 %v333_v40  ;;  %v331_v44 = vld [vmem:[%s786_s6 + $0x68] sm:$0xff]  ;;  %v346_v45 = vld [vmem:[%s786_s6 + $0xe0] sm:$0xff] }
  0x10   :  { %247 = vmatprep.subr.mxu0 %v214_v17  ;;  %452 = vmatprep.subr.mxu1 %v348_v41  ;;  %v330_v46 = vld [vmem:[%s786_s6 + $0x60] sm:$0xff]  ;;  %v345_v47 = vld [vmem:[%s786_s6 + $0xd8] sm:$0xff]  ;;  %v344_v49 = vld [vmem:[%s786_s6 + $0xd0] sm:$0xff]  ;;  %v228_v16 = vshrl.u32 %v227_v15, 7 }
  0x11   :  { %248 = vmatpush1.msra.mxu0 %v213_v18  ;;  %453 = vmatpush3.msra.mxu1 %v332_v42  ;;  %v329_v48 = vld [vmem:[%s786_s6 + $0x58] sm:$0xff]  ;;  %v328_v50 = vld [vmem:[%s786_s6 + $0x50] sm:$0xff]  ;;  %v343_v51 = vld [vmem:[%s786_s6 + $0xc8] sm:$0xff] }
  0x12   :  { %249 = vmatprep.subr.mxu0 %v212_v19  ;;  %454 = vmatprep.subr.mxu1 %v347_v43  ;;  %v327_v52 = vld [vmem:[%s786_s6 + $0x48] sm:$0xff]  ;;  %v342_v53 = vld [vmem:[%s786_s6 + $0xc0] sm:$0xff]  ;;  %v341_v55 = vld [vmem:[%s786_s6 + $0xb8] sm:$0xff]  ;;  %v229_v17 = vsub.s32 0, %v228_v16  ;;  %v233_v19 = vsub.s32 1, %v228_v16 }
  0x13   :  { %250 = vmatpush1.msra.mxu0 %v211_v20  ;;  %455 = vmatpush3.msra.mxu1 %v331_v44  ;;  %v326_v54 = vld [vmem:[%s786_s6 + $0x40] sm:$0xff]  ;;  %v325_v56 = vld [vmem:[%s786_s6 + $0x38] sm:$0xff]  ;;  %v340_v57 = vld [vmem:[%s786_s6 + $0xb0] sm:$0xff] }
  0x14   :  { %251 = vmatprep.subr.mxu0 %v210_v21  ;;  %456 = vmatprep.subr.mxu1 %v346_v45  ;;  %v324_v58 = vld [vmem:[%s786_s6 + $0x30] sm:$0xff]  ;;  %v339_v59 = vld [vmem:[%s786_s6 + $0xa8] sm:$0xff]  ;;  %v338_v61 = vld [vmem:[%s786_s6 + $0xa0] sm:$0xff] }
  0x15   :  { %252 = vmatpush1.msra.mxu0 %v209_v22  ;;  %457 = vmatpush3.msra.mxu1 %v330_v46  ;;  %v323_v60 = vld [vmem:[%s786_s6 + $0x28] sm:$0xff]  ;;  %v322_v62 = vld [vmem:[%s786_s6 + $0x20] sm:$0xff]  ;;  %v337_v8 = vld [vmem:[%s786_s6 + $0x98] sm:$0xff] }
  0x16   :  { %253 = vmatprep.subr.mxu0 %v208_v23  ;;  %458 = vmatprep.subr.mxu1 %v345_v47  ;;  %v321_v9 = vld [vmem:[%s786_s6 + $0x18] sm:$0xff]  ;;  %v336_v10 = vld [vmem:[%s786_s6 + $0x90] sm:$0xff]  ;;  %v335_v11 = vld [vmem:[%s786_s6 + $0x88] sm:$0xff] }
  0x17   :  { %254 = vmatpush1.msra.mxu0 %v207_v24  ;;  %459 = vmatpush3.msra.mxu1 %v329_v48  ;;  %v319_v12 = vld [vmem:[%s786_s6 + $0x8] sm:$0xff]  ;;  %v334_v13 = vld [vmem:[%s786_s6 + $0x80] sm:$0xff] }
  0x18   :  { %255 = vmatprep.subr.mxu0 %v206_v25  ;;  %460 = vmatprep.subr.mxu1 %v344_v49  ;;  %v318_v14 = vld [vmem:[%s786_s6] sm:$0xff] }
  0x19   :  { %256 = vmatpush1.msra.mxu0 %v205_v26  ;;  %461 = vmatpush3.msra.mxu1 %v328_v50  ;;  %v225_v18 = vld [vmem:[%s787_s5] sm:$0x3] }
  0x1a   :  { %257 = vmatprep.subr.mxu0 %v204_v27  ;;  %462 = vmatprep.subr.mxu1 %v343_v51  ;;  %v230_v20 = vrot.slane %v225_v18, %v229_v17  ;;  %v234_v21 = vrot.slane %v225_v18, %v233_v19 }
  0x1b   :  { %258 = vmatpush1.msra.mxu0 %v203_v28  ;;  %463 = vmatpush3.msra.mxu1 %v327_v52 }
  0x1c   :  { %259 = vmatprep.subr.mxu0 %v202_v29  ;;  %464 = vmatprep.subr.mxu1 %v342_v53 }
  0x1d   :  { %260 = vmatpush1.msra.mxu0 %v201_v30  ;;  %465 = vmatpush3.msra.mxu1 %v326_v54 }
  0x1e   :  { %261 = vmatprep.subr.mxu0 %v200_v31  ;;  %466 = vmatprep.subr.mxu1 %v341_v55 }
  0x1f   :  { %262 = vmatpush1.msra.mxu0 %v199_v32  ;;  %467 = vmatpush3.msra.mxu1 %v325_v56 }
  0x20   :  { %263 = vmatprep.subr.mxu0 %v198_v33  ;;  %468 = vmatprep.subr.mxu1 %v340_v57 }
  0x21   :  { %264 = vmatpush1.msra.mxu0 %v197_v34  ;;  %469 = vmatpush3.msra.mxu1 %v324_v58 }
  0x22   :  { %265 = vmatprep.subr.mxu0 %v196_v35  ;;  %470 = vmatprep.subr.mxu1 %v339_v59  ;;  %v443_v35 = vld [vmem:[%s788_s7] ss:$0 sm:$0xff] }
  0x23   :  { %266 = vmatpush1.msra.mxu0 %v195_v36  ;;  %471 = vmatpush3.msra.mxu1 %v323_v60 }
  0x24   :  { %267 = vmatprep.subr.mxu0 %v194_v37  ;;  %472 = vmatprep.subr.mxu1 %v338_v61 }
  0x25   :  { %268 = vmatpush1.msra.mxu0 %v193_v38  ;;  %473 = vmatpush3.msra.mxu1 %v322_v62 }
  0x26   :  { %474 = vmatprep.subr.mxu1 %v337_v8 }
  0x27   :  { %475 = vmatpush3.msra.mxu1 %v321_v9 }
  0x28   :  { %476 = vmatprep.subr.mxu1 %v336_v10 }
  0xc6   :  { %v494_v63 = vpop.f32.mrf.mxu0 }
  0xc7   :  { %v177_v0 = vpop.f32.mrf.mxu1 }
  0xc8   :  { %v111_v2 = vpop.f32.mrf.mxu0 }
  0xc9   :  { %v184_v3 = vadd.f32 %v177_v0, %v111_v2  ;;  %v499_v4 = vpop.f32.mrf.mxu1 }
  0xcb   :  { %v180_v5 = vpop.f32.mrf.mxu1  ;;  %302 = vmatmul.mubr.f32.vlgmr.msra.gmra.mxu0 %v184_v3 }
  0xcc   :  { %307 = vmatprep.mubr.f32.mxu0 %v505_v1  ;;  %v185_v6 = vadd.f32 %v494_v63, %v180_v5  ;;  %v320_v1 = vld [vmem:[%s786_s6 + $0x10] sm:$0xff] }
  0xcd   :  { %v500_v7 = vpop.f32.mrf.mxu1  ;;  %477 = vmatpush3.msra.mxu1 %v320_v1 }
  0xce   :  { %478 = vmatprep.subr.mxu1 %v335_v11 }
  0xcf   :  { %308 = vmatmul.mubr.f32.gmra.mxu0 %v185_v6  ;;  %479 = vmatpush3.msra.mxu1 %v319_v12 }
  0xd0   :  { %480 = vmatprep.subr.mxu1 %v334_v13 }
  0xd1   :  { %481 = vmatpush3.msra.mxu1 %v318_v14 }
 0x18b   :  { %v303_v22 = vpop.f32.mrf.mxu0 }
 0x18c   :  { %v304_v23 = vadd.f32 %v303_v22, %v230_v20 }
 0x18d   :  { %v305_v24 = vpop.f32.mrf.mxu0 }
 0x18e   :  { %v306_v25 = vadd.f32 %v305_v24, %v234_v21  ;;  %v314_v28 = vmax.f32 %v304_v23, 0.0 }
 0x18f   :  { %v309_v26 = vpop.f32.mrf.mxu0 }
 0x190   :  { %v315_v27 = vmax.f32 %v306_v25, 0.0  ;;  %v310_v29 = vadd.f32 %v309_v26, %v230_v20 }
 0x191   :  { %v311_v30 = vpop.f32.mrf.mxu0 }
 0x192   :  { %v312_v31 = vadd.f32 %v311_v30, %v234_v21  ;;  %421 = vmatprep.mubr.f32.mxu1 %v315_v27  ;;  %v316_v33 = vmax.f32 %v310_v29, 0.0 }
 0x193   :  { %422 = vmatmul.mubr.f32.vlgmr.msra.gmra.mxu1 %v314_v28 }
 0x194   :  { %v317_v32 = vmax.f32 %v312_v31, 0.0 }
 0x196   :  { %426 = vmatprep.mubr.f32.mxu1 %v317_v32 }
 0x197   :  { %427 = vmatmul.mubr.f32.gmra.mxu1 %v316_v33 }
 0x253   :  { %v482_v34 = vpop.f32.mrf.mxu1 }
 0x255   :  { %v483_v36 = vpop.f32.mrf.mxu1 }
 0x256   :  { %v484_v37 = vadd.f32 %v483_v36, %v482_v34 }
 0x257   :  { %v485_v38 = vpop.f32.mrf.mxu1 }
 0x258   :  { %v424_v39 = vadd.f32 %v484_v37, %v443_v35 }
 0x259   :  { %v486_v40 = vpop.f32.mrf.mxu1 }
 0x25a   :  { %432 = vst [vmem:[%s789_s8] sm:$0xff] %v424_v39  ;;  %v487_v41 = vadd.f32 %v486_v40, %v485_v38 }
 0x25c   :  { %v429_v42 = vadd.f32 %v487_v41, %v443_v35 }
 0x25e   :  { %433 = vst [vmem:[%s789_s8 + $0x8] sm:$0xff] %v429_v42 }

// kernel: gnn_forward.4
= control target key start
LH: loop header
LB: loop body
LE: loop exit
PB: predicated region body
PF: predicated region fallthrough
CT: control target
= control target key end

     0   :  { %13 = vsyncpa [#allocation4], 0  ;;  %s545_s27 = smov [#allocation3]   ;;  %s821_s0 = inlined_call_operand.vmem [shape: bf16[16,16], index: 0, kind: input, shape index: {}]   ;;  %s822_s1 = inlined_call_operand.vmem [shape: bf16[16,128], index: 1, kind: input, shape index: {}]   ;;  %s823_s2 = inlined_call_operand.hbm [shape: f32[16,16], index: 2, kind: input, shape index: {}]   ;;  %s824_s3 = inlined_call_operand.vmem [shape: f32[16,128], index: 3, kind: input, shape index: {}]   ;;  %s825_s4 = inlined_call_operand.vmem [shape: f32[128,256], index: 4, kind: input, shape index: {}]   ;;  %s826_s5 = inlined_call_operand.vmem [shape: f32[1,256], index: 5, kind: input, shape index: {}]   ;;  %s827_s6 = inlined_call_operand.vmem [shape: f32[256,128], index: 6, kind: input, shape index: {}]   ;;  %s828_s7 = inlined_call_operand.vmem [shape: f32[1,128], index: 7, kind: input, shape index: {}]   ;;  %s829_s8 = inlined_call_operand.vmem [shape: f32[16,128], index: 8, kind: output, shape index: {}]  }
   0x1   :  { %s23_s28 = sshll.u32 %s545_s27, 4  ;;  %s24_s28 = int_to_ptr.vmem [resolvable:$true] %s23_s28 }
   0x2   :  { %s531_s29 = scalar_lea.vmem %s24_s28, 256  ;;  %p536_p1 = scmp.lt.s32.totalorder %s24_s28, %s24_s28 }
   0x3   :  { %p532_p0 = scmp.ne.s32.totalorder %s24_s28, %s531_s29  ;;  %p537_p2 = scmp.lt.s32.totalorder %s531_s29, %s531_s29 }
   0x5   :  { %p538_p3 = por %p537_p2, %p536_p1 }
   0x7   :  { %p539_p4 = pnand %p538_p3, %p532_p0 }
   0x9   :  { %542 = shalt.err (!%p539_p4)
}
   0xa   :  { %s546_s30 = smov 128   ;;  %s547_s9 = smov 8  }
   0xb   :  { %29 = dma.hbm_to_vmem [thread:$0]  %s823_s2, 256, %s24_s28, [#allocation4], %s546_s30, %s546_s30, %s547_s9  }
   0xc   :  { %543 = dma.done.wait [#allocation4], 256  }
   0xd   :  { %544 = vsyncadd [#allocation4], 4294967040  ;;  %v548_v0 = vmov 0.0   ;;  %vm549_vm0 = vmmov 0   ;;  %vm52_vm1 = vcmask 130048   ;;  %v51_v1 = vld [vmem:[%s824_s3 + $0x8] sm:$0xff] }
   0xe   :  { %510 = vmatprep.subr.bf16.mxu1 %v548_v0  ;;  %512 = vmatprep.mubr.msk.bf16.mxu1 %vm549_vm0, %v548_v0  ;;  %v50_v2 = vld [vmem:[%s824_s3] sm:$0xff]  ;;  %v48_v4 = vld [vmem:[#allocation3] sm:$0xff]  ;;  %v237_v8 = vld [vmem:[%s825_s4 + $0xf0] sm:$0xff] }
   0xf   :  { %503 = vmatprep.subr.mxu0 %v51_v1  ;;  %v521_v3 = vld [vmem:[%s822_s1] sm:$0xff]   ;;  %507 = vmatprep.mubr.msk.f32.mxu0 %vm52_vm1, %v48_v4  ;;  %v238_v7 = vld [vmem:[%s825_s4 + $0xf8] sm:$0xff]  ;;  %v236_v9 = vld [vmem:[%s825_s4 + $0xe8] sm:$0xff] }
  0x10   :  { %504 = vmatpush3.msra.mxu0 %v51_v1  ;;  %v49_v5 = vld [vmem:[#allocation3 + $0x8] sm:$0xff]  ;;  %511 = vmatpush3.bf16.msra.mxu1 %v521_v3  ;;  %v234_v11 = vld [vmem:[%s825_s4 + $0xd8] sm:$0xff]  ;;  %v233_v12 = vld [vmem:[%s825_s4 + $0xd0] sm:$0xff] }
  0x11   :  { %505 = vmatprep.subr.mxu0 %v50_v2  ;;  %v522_v6 = vld [vmem:[%s821_s0] sm:$0xff]   ;;  %v232_v13 = vld [vmem:[%s825_s4 + $0xc8] sm:$0xff]  ;;  %v230_v15 = vld [vmem:[%s825_s4 + $0xb8] sm:$0xff] }
  0x12   :  { %506 = vmatpush3.msra.mxu0 %v50_v2  ;;  %v235_v10 = vld [vmem:[%s825_s4 + $0xe0] sm:$0xff]  ;;  %v229_v16 = vld [vmem:[%s825_s4 + $0xb0] sm:$0xff]  ;;  %v228_v17 = vld [vmem:[%s825_s4 + $0xa8] sm:$0xff] }
  0x13   :  { %508 = vmatmul.mubr.msk.f32.vlgmr.msra.gmra.mxu0 %vm52_vm1, %v49_v5  ;;  %251 = vmatprep.subr.mxu0 %v238_v7  ;;  %v231_v14 = vld [vmem:[%s825_s4 + $0xc0] sm:$0xff]  ;;  %v226_v19 = vld [vmem:[%s825_s4 + $0x98] sm:$0xff]  ;;  %v225_v20 = vld [vmem:[%s825_s4 + $0x90] sm:$0xff] }
  0x14   :  { %513 = vmatmul.mubr.msk.bf16.vlgmr.msra.gmra.mxu1 %vm52_vm1, %v522_v6  ;;  %252 = vmatpush1.msra.mxu0 %v237_v8  ;;  %v227_v18 = vld [vmem:[%s825_s4 + $0xa0] sm:$0xff]  ;;  %v224_v21 = vld [vmem:[%s825_s4 + $0x88] sm:$0xff]  ;;  %v222_v23 = vld [vmem:[%s825_s4 + $0x78] sm:$0xff] }
  0x15   :  { %253 = vmatprep.subr.mxu0 %v236_v9  ;;  %315 = vmatprep.mubr.f32.mxu0 %v548_v0  ;;  %v223_v22 = vld [vmem:[%s825_s4 + $0x80] sm:$0xff]  ;;  %v221_v24 = vld [vmem:[%s825_s4 + $0x70] sm:$0xff]  ;;  %v220_v25 = vld [vmem:[%s825_s4 + $0x68] sm:$0xff] }
  0x16   :  { %254 = vmatpush1.msra.mxu0 %v235_v10  ;;  %v219_v26 = vld [vmem:[%s825_s4 + $0x60] sm:$0xff]  ;;  %v218_v27 = vld [vmem:[%s825_s4 + $0x58] sm:$0xff]  ;;  %v217_v28 = vld [vmem:[%s825_s4 + $0x50] sm:$0xff] }
  0x17   :  { %255 = vmatprep.subr.mxu0 %v234_v11  ;;  %v216_v29 = vld [vmem:[%s825_s4 + $0x48] sm:$0xff]  ;;  %v215_v30 = vld [vmem:[%s825_s4 + $0x40] sm:$0xff]  ;;  %v214_v31 = vld [vmem:[%s825_s4 + $0x38] sm:$0xff] }
  0x18   :  { %256 = vmatpush1.msra.mxu0 %v233_v12  ;;  %v213_v32 = vld [vmem:[%s825_s4 + $0x30] sm:$0xff]  ;;  %v212_v33 = vld [vmem:[%s825_s4 + $0x28] sm:$0xff]  ;;  %v211_v34 = vld [vmem:[%s825_s4 + $0x20] sm:$0xff] }
  0x19   :  { %257 = vmatprep.subr.mxu0 %v232_v13  ;;  %v210_v35 = vld [vmem:[%s825_s4 + $0x18] sm:$0xff]  ;;  %v209_v36 = vld [vmem:[%s825_s4 + $0x10] sm:$0xff]  ;;  %v208_v37 = vld [vmem:[%s825_s4 + $0x8] sm:$0xff] }
  0x1a   :  { %258 = vmatpush1.msra.mxu0 %v231_v14  ;;  %v207_v38 = vld [vmem:[%s825_s4] sm:$0xff]  ;;  %v363_v39 = vld [vmem:[%s827_s6 + $0xf8] sm:$0xff]  ;;  %v362_v41 = vld [vmem:[%s827_s6 + $0xf0] sm:$0xff] }
  0x1b   :  { %259 = vmatprep.subr.mxu0 %v230_v15  ;;  %v347_v40 = vld [vmem:[%s827_s6 + $0x78] sm:$0xff]  ;;  %465 = vmatprep.subr.mxu1 %v363_v39  ;;  %v346_v42 = vld [vmem:[%s827_s6 + $0x70] sm:$0xff]  ;;  %v361_v43 = vld [vmem:[%s827_s6 + $0xe8] sm:$0xff]  ;;  %v241_v15 = vlaneseq }
  0x1c   :  { %260 = vmatpush1.msra.mxu0 %v229_v16  ;;  %466 = vmatpush3.msra.mxu1 %v347_v40  ;;  %v345_v44 = vld [vmem:[%s827_s6 + $0x68] sm:$0xff]  ;;  %v360_v45 = vld [vmem:[%s827_s6 + $0xe0] sm:$0xff]  ;;  %v359_v47 = vld [vmem:[%s827_s6 + $0xd8] sm:$0xff] }
  0x1d   :  { %261 = vmatprep.subr.mxu0 %v228_v17  ;;  %467 = vmatprep.subr.mxu1 %v362_v41  ;;  %v344_v46 = vld [vmem:[%s827_s6 + $0x60] sm:$0xff]  ;;  %v343_v48 = vld [vmem:[%s827_s6 + $0x58] sm:$0xff]  ;;  %v358_v49 = vld [vmem:[%s827_s6 + $0xd0] sm:$0xff]  ;;  %v242_v16 = vshrl.u32 %v241_v15, 7 }
  0x1e   :  { %262 = vmatpush1.msra.mxu0 %v227_v18  ;;  %468 = vmatpush3.msra.mxu1 %v346_v42  ;;  %v342_v50 = vld [vmem:[%s827_s6 + $0x50] sm:$0xff]  ;;  %v357_v51 = vld [vmem:[%s827_s6 + $0xc8] sm:$0xff]  ;;  %v356_v53 = vld [vmem:[%s827_s6 + $0xc0] sm:$0xff] }
  0x1f   :  { %263 = vmatprep.subr.mxu0 %v226_v19  ;;  %469 = vmatprep.subr.mxu1 %v361_v43  ;;  %v341_v52 = vld [vmem:[%s827_s6 + $0x48] sm:$0xff]  ;;  %v340_v54 = vld [vmem:[%s827_s6 + $0x40] sm:$0xff]  ;;  %v355_v55 = vld [vmem:[%s827_s6 + $0xb8] sm:$0xff]  ;;  %v243_v17 = vsub.s32 0, %v242_v16  ;;  %v247_v19 = vsub.s32 1, %v242_v16 }
  0x20   :  { %264 = vmatpush1.msra.mxu0 %v225_v20  ;;  %470 = vmatpush3.msra.mxu1 %v345_v44  ;;  %v339_v56 = vld [vmem:[%s827_s6 + $0x38] sm:$0xff]  ;;  %v354_v57 = vld [vmem:[%s827_s6 + $0xb0] sm:$0xff]  ;;  %v353_v59 = vld [vmem:[%s827_s6 + $0xa8] sm:$0xff] }
  0x21   :  { %265 = vmatprep.subr.mxu0 %v224_v21  ;;  %471 = vmatprep.subr.mxu1 %v360_v45  ;;  %v338_v58 = vld [vmem:[%s827_s6 + $0x30] sm:$0xff]  ;;  %v337_v60 = vld [vmem:[%s827_s6 + $0x28] sm:$0xff]  ;;  %v352_v61 = vld [vmem:[%s827_s6 + $0xa0] sm:$0xff] }
  0x22   :  { %266 = vmatpush1.msra.mxu0 %v223_v22  ;;  %472 = vmatpush3.msra.mxu1 %v344_v46  ;;  %v336_v62 = vld [vmem:[%s827_s6 + $0x20] sm:$0xff]  ;;  %v351_v8 = vld [vmem:[%s827_s6 + $0x98] sm:$0xff]  ;;  %v350_v10 = vld [vmem:[%s827_s6 + $0x90] sm:$0xff] }
  0x23   :  { %267 = vmatprep.subr.mxu0 %v222_v23  ;;  %473 = vmatprep.subr.mxu1 %v359_v47  ;;  %v335_v9 = vld [vmem:[%s827_s6 + $0x18] sm:$0xff]  ;;  %v349_v11 = vld [vmem:[%s827_s6 + $0x88] sm:$0xff]  ;;  %v348_v13 = vld [vmem:[%s827_s6 + $0x80] sm:$0xff] }
  0x24   :  { %268 = vmatpush1.msra.mxu0 %v221_v24  ;;  %474 = vmatpush3.msra.mxu1 %v343_v48  ;;  %v333_v12 = vld [vmem:[%s827_s6 + $0x8] sm:$0xff]  ;;  %v332_v14 = vld [vmem:[%s827_s6] sm:$0xff] }
  0x25   :  { %269 = vmatprep.subr.mxu0 %v220_v25  ;;  %475 = vmatprep.subr.mxu1 %v358_v49  ;;  %v239_v18 = vld [vmem:[%s826_s5] sm:$0x3] }
  0x26   :  { %270 = vmatpush1.msra.mxu0 %v219_v26  ;;  %476 = vmatpush3.msra.mxu1 %v342_v50  ;;  %v244_v20 = vrot.slane %v239_v18, %v243_v17  ;;  %v248_v21 = vrot.slane %v239_v18, %v247_v19 }
  0x27   :  { %271 = vmatprep.subr.mxu0 %v218_v27  ;;  %477 = vmatprep.subr.mxu1 %v357_v51 }
  0x28   :  { %272 = vmatpush1.msra.mxu0 %v217_v28  ;;  %478 = vmatpush3.msra.mxu1 %v341_v52 }
  0x29   :  { %273 = vmatprep.subr.mxu0 %v216_v29  ;;  %479 = vmatprep.subr.mxu1 %v356_v53 }
  0x2a   :  { %274 = vmatpush1.msra.mxu0 %v215_v30  ;;  %480 = vmatpush3.msra.mxu1 %v340_v54 }
  0x2b   :  { %275 = vmatprep.subr.mxu0 %v214_v31  ;;  %481 = vmatprep.subr.mxu1 %v355_v55 }
  0x2c   :  { %276 = vmatpush1.msra.mxu0 %v213_v32  ;;  %482 = vmatpush3.msra.mxu1 %v339_v56 }
  0x2d   :  { %277 = vmatprep.subr.mxu0 %v212_v33  ;;  %483 = vmatprep.subr.mxu1 %v354_v57 }
  0x2e   :  { %278 = vmatpush1.msra.mxu0 %v211_v34  ;;  %484 = vmatpush3.msra.mxu1 %v338_v58 }
  0x2f   :  { %279 = vmatprep.subr.mxu0 %v210_v35  ;;  %485 = vmatprep.subr.mxu1 %v353_v59  ;;  %v458_v35 = vld [vmem:[%s828_s7] ss:$0 sm:$0xff] }
  0x30   :  { %280 = vmatpush1.msra.mxu0 %v209_v36  ;;  %486 = vmatpush3.msra.mxu1 %v337_v60 }
  0x31   :  { %281 = vmatprep.subr.mxu0 %v208_v37  ;;  %487 = vmatprep.subr.mxu1 %v352_v61 }
  0x32   :  { %282 = vmatpush1.msra.mxu0 %v207_v38  ;;  %488 = vmatpush3.msra.mxu1 %v336_v62 }
  0x33   :  { %489 = vmatprep.subr.mxu1 %v351_v8 }
  0x34   :  { %490 = vmatpush3.msra.mxu1 %v335_v9 }
  0x35   :  { %491 = vmatprep.subr.mxu1 %v350_v10 }
  0xd3   :  { %v509_v63 = vpop.f32.mrf.mxu0 }
  0xd4   :  { %v191_v1 = vpop.f32.mrf.mxu1 }
  0xd5   :  { %v125_v2 = vpop.f32.mrf.mxu0 }
  0xd6   :  { %v198_v3 = vadd.f32 %v191_v1, %v125_v2  ;;  %v514_v4 = vpop.f32.mrf.mxu1 }
  0xd8   :  { %v194_v5 = vpop.f32.mrf.mxu1  ;;  %316 = vmatmul.mubr.f32.vlgmr.msra.gmra.mxu0 %v198_v3 }
  0xd9   :  { %321 = vmatprep.mubr.f32.mxu0 %v548_v0  ;;  %v199_v6 = vadd.f32 %v509_v63, %v194_v5  ;;  %v334_v0 = vld [vmem:[%s827_s6 + $0x10] sm:$0xff] }
  0xda   :  { %v515_v7 = vpop.f32.mrf.mxu1  ;;  %492 = vmatpush3.msra.mxu1 %v334_v0 }
  0xdb   :  { %493 = vmatprep.subr.mxu1 %v349_v11 }
  0xdc   :  { %322 = vmatmul.mubr.f32.gmra.mxu0 %v199_v6  ;;  %494 = vmatpush3.msra.mxu1 %v333_v12 }
  0xdd   :  { %495 = vmatprep.subr.mxu1 %v348_v13 }
  0xde   :  { %496 = vmatpush3.msra.mxu1 %v332_v14 }
 0x198   :  { %v317_v22 = vpop.f32.mrf.mxu0 }
 0x199   :  { %v318_v23 = vadd.f32 %v317_v22, %v244_v20 }
 0x19a   :  { %v319_v24 = vpop.f32.mrf.mxu0 }
 0x19b   :  { %v320_v25 = vadd.f32 %v319_v24, %v248_v21  ;;  %v328_v28 = vmax.f32 %v318_v23, 0.0 }
 0x19c   :  { %v323_v26 = vpop.f32.mrf.mxu0 }
 0x19d   :  { %v329_v27 = vmax.f32 %v320_v25, 0.0  ;;  %v324_v29 = vadd.f32 %v323_v26, %v244_v20 }
 0x19e   :  { %v325_v30 = vpop.f32.mrf.mxu0 }
 0x19f   :  { %v326_v31 = vadd.f32 %v325_v30, %v248_v21  ;;  %435 = vmatprep.mubr.f32.mxu1 %v329_v27  ;;  %v330_v33 = vmax.f32 %v324_v29, 0.0 }
 0x1a0   :  { %436 = vmatmul.mubr.f32.vlgmr.msra.gmra.mxu1 %v328_v28 }
 0x1a1   :  { %v331_v32 = vmax.f32 %v326_v31, 0.0 }
 0x1a3   :  { %440 = vmatprep.mubr.f32.mxu1 %v331_v32 }
 0x1a4   :  { %441 = vmatmul.mubr.f32.gmra.mxu1 %v330_v33 }
 0x260   :  { %v497_v34 = vpop.f32.mrf.mxu1 }
 0x262   :  { %v498_v36 = vpop.f32.mrf.mxu1 }
 0x263   :  { %v499_v37 = vadd.f32 %v498_v36, %v497_v34 }
 0x264   :  { %v500_v38 = vpop.f32.mrf.mxu1 }
 0x265   :  { %v438_v39 = vadd.f32 %v499_v37, %v458_v35 }
 0x266   :  { %v501_v40 = vpop.f32.mrf.mxu1 }
 0x267   :  { %446 = vst [vmem:[%s829_s8] sm:$0xff] %v438_v39  ;;  %v502_v41 = vadd.f32 %v501_v40, %v500_v38 }
 0x269   :  { %v443_v42 = vadd.f32 %v502_v41, %v458_v35 }
 0x26b   :  { %447 = vst [vmem:[%s829_s8 + $0x8] sm:$0xff] %v443_v42 }
 0x26c   :  { %452 = vsyncpa [#allocation4], 1 }

</bundles_post_ra>
